<compile_context>
chip_gen: v7x
topology: tpu7x:2x2x1
jax: 0.10.0
libtpu: 0.0.40
codegen_flags: <defaults>
</compile_context>

<pallas_src>
import functools

import jax
import jax.numpy as jnp
from jax.experimental import pallas as pl
from jax.experimental.pallas import tpu as pltpu


# --------------------------------------------------------------------------
# Generation-aware VMEM sizing.
# --------------------------------------------------------------------------
def _physical_vmem_bytes():
    try:
        return int(pltpu.get_tpu_info().vmem_capacity_bytes)
    except Exception:
        return 64 * 1024 * 1024          # conservative fallback (v7x per-TC)


_PHYS_VMEM = _physical_vmem_bytes()
# v5e/v6e (128 MiB physical) -> 64 MiB scoped limit; v7x (64 MiB) -> 32 MiB.
_VMEM_LIMIT = min(_PHYS_VMEM // 2, 64 * 1024 * 1024)
# Per-step block working set (double-buffered inputs + temporaries) budget.
_VMEM_BUDGET = _VMEM_LIMIT // 2

_COMPILER_PARAMS = pltpu.CompilerParams(
    dimension_semantics=("parallel",),
    vmem_limit_bytes=_VMEM_LIMIT,
)

# Approximate number of live full-block f32 temporaries inside the kernels
# (f32 upcasts, centered logits, exp terms, log_p/log_q/q, iota/where mask).
_TEMP_BLOCKS_F32 = 8


def _pick_tm(n_rows, n_classes, itemsize, row_factor=1):
    """Row-tile size: always a multiple of 128 or the full row extent."""
    per_row = row_factor * n_classes * (
        2 * 2 * itemsize              # student + teacher blocks, double-buffered
        + _TEMP_BLOCKS_F32 * 4)       # in-kernel f32 temporaries
    cap = max(1, _VMEM_BUDGET // max(per_row, 1))
    if n_rows <= 128 or cap >= n_rows:
        tm = n_rows
    else:
        tm = min(2048, max(128, (cap // 128) * 128))
    # Guarantee >= 2 grid steps when the row extent allows it while keeping the
    # output tiles lane-dense: gives the 'parallel' axis something to shard on
    # v7x's two TensorCores and keeps the DMA pipeline overlapped everywhere.
    if tm == n_rows and n_rows >= 256:
        tm = ((n_rows // 2 + 127) // 128) * 128
    return tm


# --------------------------------------------------------------------------
# Fused main kernel: per-row CE(student), per-row KL(student, teacher, T) and
# cosine(teacher_half0, teacher_half1) in one pass over (2, TM, C) blocks.
# --------------------------------------------------------------------------
def _fused_main_kernel(s_ref, t_ref, tgt_ref, ce_ref, kl_ref, cos_ref, *, T):
    s = s_ref[...].astype(jnp.float32)        # (2, TM, C)
    t = t_ref[...].astype(jnp.float32)        # (2, TM, C)
    tgt = tgt_ref[...]                         # (2, TM, 1) int32

    inv_T = 1.0 / T

    # ---- student cross entropy (reuses s_max; exp #1) ----
    s_max = jnp.max(s, axis=-1, keepdims=True)
    s_c = s - s_max                             # centered, reused for KL below
    exp_s = jnp.exp(s_c)
    lse = jnp.log(jnp.sum(exp_s, axis=-1)) + s_max[..., 0]
    cls = jax.lax.broadcasted_iota(jnp.int32, s.shape, 2)
    picked = jnp.sum(jnp.where(cls == tgt, s, 0.0), axis=-1)
    ce_ref[...] = lse - picked                  # (2, TM), lane-dense

    # ---- KL(softmax(t/T) || softmax(s/T)) * T^2, summed over classes ----
    # max(s/T) == max(s)/T (T > 0), so the centered student block is reused.
    st_c = s_c * inv_T
    exp_st = jnp.exp(st_c)                      # exp #2
    log_p = st_c - jnp.log(jnp.sum(exp_st, axis=-1, keepdims=True))

    t_max = jnp.max(t, axis=-1, keepdims=True)
    tt_c = (t - t_max) * inv_T
    exp_tt = jnp.exp(tt_c)                      # exp #3 (the only teacher exp)
    denom_t = jnp.sum(exp_tt, axis=-1, keepdims=True)
    log_q = tt_c - jnp.log(denom_t)
    q = exp_tt * pl.reciprocal(denom_t)         # no 4th exp; (..,1) reciprocal
    kl_ref[...] = jnp.sum(q * (log_q - log_p), axis=-1) * (T * T)   # (2, TM)

    # ---- cosine similarity between the two teacher halves (overflow-safe) ----
    a = t[0]
    b = t[1]
    dot = jnp.sum(a * b, axis=-1)
    na2 = jnp.sum(a * a, axis=-1)
    nb2 = jnp.sum(b * b, axis=-1)
    cos_ref[0, :] = (dot
                     * jax.lax.rsqrt(jnp.maximum(na2, 1e-16))
                     * jax.lax.rsqrt(jnp.maximum(nb2, 1e-16)))


def _fused_main(logit_s, logit_t, targets, T):
    N, C = logit_s.shape
    assert N % 2 == 0, "CCD pairs the two halves of the batch"
    n = N // 2
    s3 = logit_s.reshape(2, n, C)                       # free reshapes
    t3 = logit_t.reshape(2, n, C)
    tgt3 = targets.astype(jnp.int32).reshape(2, n, 1)

    tm = _pick_tm(n, C, logit_s.dtype.itemsize, row_factor=2)
    grid = (pl.cdiv(n, tm),)

    ce, kl, cos = pl.pallas_call(
        functools.partial(_fused_main_kernel, T=float(T)),
        out_shape=(
            jax.ShapeDtypeStruct((2, n), jnp.float32),
            jax.ShapeDtypeStruct((2, n), jnp.float32),
            jax.ShapeDtypeStruct((1, n), jnp.float32),
        ),
        grid=grid,
        in_specs=[
            pl.BlockSpec((2, tm, C), lambda i: (0, i, 0)),
            pl.BlockSpec((2, tm, C), lambda i: (0, i, 0)),
            pl.BlockSpec((2, tm, 1), lambda i: (0, i, 0)),
        ],
        out_specs=(
            pl.BlockSpec((2, tm), lambda i: (0, i)),
            pl.BlockSpec((2, tm), lambda i: (0, i)),
            pl.BlockSpec((1, tm), lambda i: (0, i)),
        ),
        compiler_params=_COMPILER_PARAMS,
    )(s3, t3, tgt3)
    return ce, kl, cos[0]


# --------------------------------------------------------------------------
# Fused CE + KL kernel for the aux rows: (TM, C) blocks, lane-dense outputs.
# --------------------------------------------------------------------------
def _ce_kl_kernel(s_ref, t_ref, tgt_ref, ce_ref, kl_ref, *, T):
    s = s_ref[...].astype(jnp.float32)        # (TM, C)
    t = t_ref[...].astype(jnp.float32)
    tgt = tgt_ref[...]                         # (TM, 1) int32

    inv_T = 1.0 / T

    s_max = jnp.max(s, axis=-1, keepdims=True)
    s_c = s - s_max
    exp_s = jnp.exp(s_c)
    lse = jnp.log(jnp.sum(exp_s, axis=-1)) + s_max[:, 0]
    cls = jax.lax.broadcasted_iota(jnp.int32, s.shape, 1)
    picked = jnp.sum(jnp.where(cls == tgt, s, 0.0), axis=-1)
    ce_ref[0, :] = lse - picked                # (TM,), lane-dense

    st_c = s_c * inv_T
    exp_st = jnp.exp(st_c)
    log_p = st_c - jnp.log(jnp.sum(exp_st, axis=-1, keepdims=True))

    t_max = jnp.max(t, axis=-1, keepdims=True)
    tt_c = (t - t_max) * inv_T
    exp_tt = jnp.exp(tt_c)
    denom_t = jnp.sum(exp_tt, axis=-1, keepdims=True)
    log_q = tt_c - jnp.log(denom_t)
    q = exp_tt * pl.reciprocal(denom_t)
    kl_ref[0, :] = jnp.sum(q * (log_q - log_p), axis=-1) * (T * T)


def _fused_ce_kl(logit_s, logit_t, labels, T):
    B, C = logit_s.shape
    tgt = labels.astype(jnp.int32).reshape(B, 1)
    tm = _pick_tm(B, C, logit_s.dtype.itemsize, row_factor=1)
    grid = (pl.cdiv(B, tm),)

    ce, kl = pl.pallas_call(
        functools.partial(_ce_kl_kernel, T=float(T)),
        out_shape=(
            jax.ShapeDtypeStruct((1, B), jnp.float32),
            jax.ShapeDtypeStruct((1, B), jnp.float32),
        ),
        grid=grid,
        in_specs=[
            pl.BlockSpec((tm, C), lambda i: (i, 0)),
            pl.BlockSpec((tm, C), lambda i: (i, 0)),
            pl.BlockSpec((tm, 1), lambda i: (i, 0)),
        ],
        out_specs=(
            pl.BlockSpec((1, tm), lambda i: (0, i)),
            pl.BlockSpec((1, tm), lambda i: (0, i)),
        ),
        compiler_params=_COMPILER_PARAMS,
    )(logit_s, logit_t, tgt)
    return ce[0], kl[0]


# --------------------------------------------------------------------------
# CCD forward (aux branch of the reference).
# `beta` and `multiple` are stored but unused by the reference forward.
# --------------------------------------------------------------------------
def ccd_forward(logit_s, logit_s_aux, logit_t, logit_t_aux, targets,
                *, T, gamma, alpha, beta, multiple):
    del beta, multiple  # unused by the reference forward
    # TODO(synk): the non-aux branch of the PyTorch reference uses
    # `loss_KD_aux` before defining it and cannot execute, so only the aux
    # branch is implemented here.
    targets = targets.astype(jnp.int32)

    # Main branch: single fused pass over logit_s / logit_t.
    ce_main, kl_main, cos = _fused_main(logit_s, logit_t, targets, T)
    loss_cls = jnp.mean(ce_main)                 # == F.cross_entropy(logit_s, targets)
    loss_KD = kl_main[0] + (cos + 1.0) * kl_main[1]

    # Aux branch: labels exactly as the PyTorch reference builds them
    # (sample-interleaved label vector applied to head-blocked rows).
    B = targets.shape[0]
    logit_s_aux = list(logit_s_aux)
    logit_t_aux = list(logit_t_aux)
    total_aux_rows = sum(int(a.shape[0]) for a in logit_s_aux)
    num_aux = total_aux_rows // B
    labels_full = jnp.stack(
        [targets * num_aux + i for i in range(num_aux)], axis=1).reshape(-1)

    same_classes = len({int(a.shape[1])
                        for a in logit_s_aux + logit_t_aux}) == 1
    aux_bytes = sum(int(a.size) * a.dtype.itemsize
                    for a in logit_s_aux + logit_t_aux)

    if same_classes and aux_bytes <= 64 * 1024 * 1024:
        # Small/moderate aux heads: ONE fused CE+KL call over all heads.
        # Head-blocked concat reproduces torch.cat(dim=0) row ordering exactly;
        # a single call amortizes launch/pipeline-ramp overhead and gives the
        # 'parallel' grid axis more tiles to shard.
        s_aux = jnp.concatenate(logit_s_aux, axis=0)
        t_aux = jnp.concatenate(logit_t_aux, axis=0)
        ce_aux, kl_aux = _fused_ce_kl(s_aux, t_aux, labels_full, T)
    else:
        # Large heads: skip the HBM concat copy, one fused call per head.
        ce_rows, kl_rows = [], []
        off = 0
        for s_h, t_h in zip(logit_s_aux, logit_t_aux):
            rows = int(s_h.shape[0])
            ce_h, kl_h = _fused_ce_kl(s_h, t_h, labels_full[off:off + rows], T)
            ce_rows.append(ce_h)
            kl_rows.append(kl_h)
            off += rows
        ce_aux = jnp.concatenate(ce_rows)
        kl_aux = jnp.concatenate(kl_rows)

    loss_cls = loss_cls + jnp.mean(ce_aux)
    return gamma * loss_cls + alpha * (jnp.mean(loss_KD) + jnp.mean(kl_aux))


# --------------------------------------------------------------------------
# Pure-JAX reference (mirrors the PyTorch module) for a sanity check.
# --------------------------------------------------------------------------
def _reference_forward(logit_s, logit_s_aux, logit_t, logit_t_aux, targets,
                       *, T, gamma, alpha):
    def kl_rows(s, t):
        log_p = jax.nn.log_softmax(s / T, axis=1)
        log_q = jax.nn.log_softmax(t / T, axis=1)
        return jnp.sum(jnp.exp(log_q) * (log_q - log_p), axis=1) * (T * T)

    def ce_mean(logits, labels):
        lse = jax.nn.logsumexp(logits, axis=1)
        picked = jnp.take_along_axis(
            logits, labels[:, None].astype(jnp.int32), axis=1)[:, 0]
        return jnp.mean(lse - picked)

    s_aux = jnp.concatenate(logit_s_aux, axis=0)
    t_aux = jnp.concatenate(logit_t_aux, axis=0)
    num_aux = s_aux.shape[0] // targets.shape[0]
    labels = jnp.stack(
        [targets * num_aux + i for i in range(num_aux)], axis=1).reshape(-1)
    loss_cls = ce_mean(logit_s, targets) + ce_mean(s_aux, labels)

    n = logit_s.shape[0] // 2
    a, b = logit_t[:n], logit_t[n:]
    cos = jnp.sum(a * b, axis=1) / jnp.maximum(
        jnp.sqrt(jnp.sum(a * a, axis=1)) * jnp.sqrt(jnp.sum(b * b, axis=1)), 1e-8)
    loss_KD = (kl_rows(logit_s[:n], logit_t[:n])
               + (cos + 1.0) * kl_rows(logit_s[n:], logit_t[n:]))
    loss_KD_aux = kl_rows(s_aux, t_aux)
    return gamma * loss_cls + alpha * (loss_KD.mean() + loss_KD_aux.mean())


if __name__ == "__main__":
    key = jax.random.PRNGKey(0)
    B, C = 8, 32          # batch (even, for the half/half split), num classes
    multiple = 4          # number of aux heads
    C_aux = C * multiple  # aux head has num_classes * multiple classes

    ks = jax.random.split(key, 5)
    logit_s = jax.random.normal(ks[0], (B, C), jnp.float32)
    logit_t = jax.random.normal(ks[1], (B, C), jnp.float32)
    logit_s_aux = [
        jax.random.normal(jax.random.fold_in(ks[2], i), (B, C_aux), jnp.float32)
        for i in range(multiple)
    ]
    logit_t_aux = [
        jax.random.normal(jax.random.fold_in(ks[3], i), (B, C_aux), jnp.float32)
        for i in range(multiple)
    ]
    targets = jax.random.randint(ks[4], (B,), 0, C, jnp.int32)

    loss_fn = jax.jit(functools.partial(
        ccd_forward, T=4.0, gamma=1.0, alpha=1.0, beta=0.0, multiple=multiple))
    loss = loss_fn(logit_s, logit_s_aux, logit_t, logit_t_aux, targets)
    loss = jax.block_until_ready(loss)

    ref = _reference_forward(
        logit_s, logit_s_aux, logit_t, logit_t_aux, targets,
        T=4.0, gamma=1.0, alpha=1.0)
    ref = jax.block_until_ready(ref)

    err = abs(float(loss) - float(ref))
    assert err <= 1e-3 * max(1.0, abs(float(ref))), (float(loss), float(ref), err)
    print("KERNEL_OK")
</pallas_src>

<mosaic_0001>
module attributes {stable_mosaic.version = 11 : i64} {
  func.func @_ce_kl_kernel(%arg0: i32, %arg1: memref<32x128xf32, #tpu.memory_space<vmem>>, %arg2: memref<32x128xf32, #tpu.memory_space<vmem>>, %arg3: memref<32x1xi32, #tpu.memory_space<vmem>>, %arg4: memref<1x32xf32, #tpu.memory_space<vmem>>, %arg5: memref<1x32xf32, #tpu.memory_space<vmem>>) attributes {dimension_semantics = [#tpu.dimension_semantics<parallel>], iteration_bounds = array<i64: 1>, scalar_prefetch = 0 : i64, scratch_operands = 0 : i64, tpu.core_type = #tpu.core_type<tc>, window_params = [{transform_indices = @transform_0, window_bounds = array<i64: 32, 128>}, {transform_indices = @transform_1, window_bounds = array<i64: 32, 128>}, {transform_indices = @transform_2, window_bounds = array<i64: 32, 1>}, {transform_indices = @transform_3, window_bounds = array<i64: 1, 32>}, {transform_indices = @transform_4, window_bounds = array<i64: 1, 32>}]} {
    %c0 = arith.constant 0 : index
    %c0_0 = arith.constant 0 : index
    %0 = vector.load %arg1[%c0, %c0_0] : memref<32x128xf32, #tpu.memory_space<vmem>>, vector<32x128xf32>
    %c0_1 = arith.constant 0 : index
    %c0_2 = arith.constant 0 : index
    %1 = vector.load %arg2[%c0_1, %c0_2] : memref<32x128xf32, #tpu.memory_space<vmem>>, vector<32x128xf32>
    %c0_3 = arith.constant 0 : index
    %c0_4 = arith.constant 0 : index
    %2 = vector.load %arg3[%c0_3, %c0_4] : memref<32x1xi32, #tpu.memory_space<vmem>>, vector<32x1xi32>
    %cst = arith.constant dense<0xFF800000> : vector<32xf32>
    %3 = vector.multi_reduction <maximumf>, %0, %cst [1] : vector<32x128xf32> to vector<32xf32>
    %4 = vector.shape_cast %3 : vector<32xf32> to vector<32x1xf32>
    %5 = vector.broadcast %4 : vector<32x1xf32> to vector<32x128xf32>
    %6 = arith.subf %0, %5 : vector<32x128xf32>
    %7 = math.exp %6 : vector<32x128xf32>
    %cst_5 = arith.constant dense<0.000000e+00> : vector<32xf32>
    %8 = vector.multi_reduction <add>, %7, %cst_5 [1] : vector<32x128xf32> to vector<32xf32>
    %9 = math.log %8 : vector<32xf32>
    %10 = vector.shape_cast %4 : vector<32x1xf32> to vector<32xf32>
    %11 = arith.addf %9, %10 : vector<32xf32>
    %12 = tpu.iota {dimensions = array<i32: 1>} : vector<32x128xi32>
    %13 = vector.broadcast %2 : vector<32x1xi32> to vector<32x128xi32>
    %14 = arith.cmpi eq, %12, %13 : vector<32x128xi32>
    %cst_6 = arith.constant 0.000000e+00 : f32
    %15 = vector.broadcast %cst_6 : f32 to vector<32x128xf32>
    %16 = arith.select %14, %0, %15 : vector<32x128xi1>, vector<32x128xf32>
    %cst_7 = arith.constant dense<0.000000e+00> : vector<32xf32>
    %17 = vector.multi_reduction <add>, %16, %cst_7 [1] : vector<32x128xf32> to vector<32xf32>
    %18 = arith.subf %11, %17 : vector<32xf32>
    %c0_8 = arith.constant 0 : index
    %c0_9 = arith.constant 0 : index
    %19 = vector.load %arg4[%c0_8, %c0_9] : memref<1x32xf32, #tpu.memory_space<vmem>>, vector<1x32xf32>
    %20 = vector.shape_cast %19 : vector<1x32xf32> to vector<32xf32>
    %21 = vector.shape_cast %18 : vector<32xf32> to vector<1x32xf32>
    tpu.vector_store %arg4[%c0_8, %c0_9], %21 {strides = array<i32>} : memref<1x32xf32, #tpu.memory_space<vmem>>, vector<1x32xf32>,
    %cst_10 = arith.constant 2.500000e-01 : f32
    %22 = vector.broadcast %cst_10 : f32 to vector<32x128xf32>
    %23 = arith.mulf %6, %22 : vector<32x128xf32>
    %24 = math.exp %23 : vector<32x128xf32>
    %cst_11 = arith.constant dense<0.000000e+00> : vector<32xf32>
    %25 = vector.multi_reduction <add>, %24, %cst_11 [1] : vector<32x128xf32> to vector<32xf32>
    %26 = vector.shape_cast %25 : vector<32xf32> to vector<32x1xf32>
    %27 = math.log %26 : vector<32x1xf32>
    %28 = vector.broadcast %27 : vector<32x1xf32> to vector<32x128xf32>
    %29 = arith.subf %23, %28 : vector<32x128xf32>
    %cst_12 = arith.constant dense<0xFF800000> : vector<32xf32>
    %30 = vector.multi_reduction <maximumf>, %1, %cst_12 [1] : vector<32x128xf32> to vector<32xf32>
    %31 = vector.shape_cast %30 : vector<32xf32> to vector<32x1xf32>
    %32 = vector.broadcast %31 : vector<32x1xf32> to vector<32x128xf32>
    %33 = arith.subf %1, %32 : vector<32x128xf32>
    %cst_13 = arith.constant 2.500000e-01 : f32
    %34 = vector.broadcast %cst_13 : f32 to vector<32x128xf32>
    %35 = arith.mulf %33, %34 : vector<32x128xf32>
    %36 = math.exp %35 : vector<32x128xf32>
    %cst_14 = arith.constant dense<0.000000e+00> : vector<32xf32>
    %37 = vector.multi_reduction <add>, %36, %cst_14 [1] : vector<32x128xf32> to vector<32xf32>
    %38 = vector.shape_cast %37 : vector<32xf32> to vector<32x1xf32>
    %39 = math.log %38 : vector<32x1xf32>
    %40 = vector.broadcast %39 : vector<32x1xf32> to vector<32x128xf32>
    %41 = arith.subf %35, %40 : vector<32x128xf32>
    %42 = tpu.reciprocal %38 : vector<32x1xf32> -> vector<32x1xf32>
    %43 = vector.broadcast %42 : vector<32x1xf32> to vector<32x128xf32>
    %44 = arith.mulf %36, %43 : vector<32x128xf32>
    %45 = arith.subf %41, %29 : vector<32x128xf32>
    %46 = arith.mulf %44, %45 : vector<32x128xf32>
    %cst_15 = arith.constant dense<0.000000e+00> : vector<32xf32>
    %47 = vector.multi_reduction <add>, %46, %cst_15 [1] : vector<32x128xf32> to vector<32xf32>
    %cst_16 = arith.constant 1.600000e+01 : f32
    %48 = vector.broadcast %cst_16 : f32 to vector<32xf32>
    %49 = arith.mulf %47, %48 : vector<32xf32>
    %c0_17 = arith.constant 0 : index
    %c0_18 = arith.constant 0 : index
    %50 = vector.load %arg5[%c0_17, %c0_18] : memref<1x32xf32, #tpu.memory_space<vmem>>, vector<1x32xf32>
    %51 = vector.shape_cast %50 : vector<1x32xf32> to vector<32xf32>
    %52 = vector.shape_cast %49 : vector<32xf32> to vector<1x32xf32>
    tpu.vector_store %arg5[%c0_17, %c0_18], %52 {strides = array<i32>} : memref<1x32xf32, #tpu.memory_space<vmem>>, vector<1x32xf32>,
    return
  }
  func.func @transform_0(%arg0: i32) -> (i32, i32) {
    %c0_i32 = arith.constant 0 : i32
    %c0_i32_0 = arith.constant 0 : i32
    return %arg0, %c0_i32 : i32, i32
  }
  func.func @transform_1(%arg0: i32) -> (i32, i32) {
    %c0_i32 = arith.constant 0 : i32
    %c0_i32_0 = arith.constant 0 : i32
    return %arg0, %c0_i32 : i32, i32
  }
  func.func @transform_2(%arg0: i32) -> (i32, i32) {
    %c0_i32 = arith.constant 0 : i32
    %c0_i32_0 = arith.constant 0 : i32
    return %arg0, %c0_i32 : i32, i32
  }
  func.func @transform_3(%arg0: i32) -> (i32, i32) {
    %c0_i32 = arith.constant 0 : i32
    %c0_i32_0 = arith.constant 0 : i32
    return %c0_i32, %arg0 : i32, i32
  }
  func.func @transform_4(%arg0: i32) -> (i32, i32) {
    %c0_i32 = arith.constant 0 : i32
    %c0_i32_0 = arith.constant 0 : i32
    return %c0_i32, %arg0 : i32, i32
  }
}

module attributes {stable_mosaic.version = 11 : i64} {
  func.func @_fused_main_kernel(%arg0: i32, %arg1: memref<2x4x32xf32, #tpu.memory_space<vmem>>, %arg2: memref<2x4x32xf32, #tpu.memory_space<vmem>>, %arg3: memref<2x4x1xi32, #tpu.memory_space<vmem>>, %arg4: memref<2x4xf32, #tpu.memory_space<vmem>>, %arg5: memref<2x4xf32, #tpu.memory_space<vmem>>, %arg6: memref<1x4xf32, #tpu.memory_space<vmem>>) attributes {dimension_semantics = [#tpu.dimension_semantics<parallel>], iteration_bounds = array<i64: 1>, scalar_prefetch = 0 : i64, scratch_operands = 0 : i64, tpu.core_type = #tpu.core_type<tc>, window_params = [{transform_indices = @transform_0, window_bounds = array<i64: 2, 4, 32>}, {transform_indices = @transform_1, window_bounds = array<i64: 2, 4, 32>}, {transform_indices = @transform_2, window_bounds = array<i64: 2, 4, 1>}, {transform_indices = @transform_3, window_bounds = array<i64: 2, 4>}, {transform_indices = @transform_4, window_bounds = array<i64: 2, 4>}, {transform_indices = @transform_5, window_bounds = array<i64: 1, 4>}]} {
    %c0 = arith.constant 0 : index
    %c0_0 = arith.constant 0 : index
    %c0_1 = arith.constant 0 : index
    %0 = vector.load %arg1[%c0, %c0_0, %c0_1] : memref<2x4x32xf32, #tpu.memory_space<vmem>>, vector<2x4x32xf32>
    %c0_2 = arith.constant 0 : index
    %c0_3 = arith.constant 0 : index
    %c0_4 = arith.constant 0 : index
    %1 = vector.load %arg2[%c0_2, %c0_3, %c0_4] : memref<2x4x32xf32, #tpu.memory_space<vmem>>, vector<2x4x32xf32>
    %c0_5 = arith.constant 0 : index
    %c0_6 = arith.constant 0 : index
    %c0_7 = arith.constant 0 : index
    %2 = vector.load %arg3[%c0_5, %c0_6, %c0_7] : memref<2x4x1xi32, #tpu.memory_space<vmem>>, vector<2x4x1xi32>
    %cst = arith.constant dense<0xFF800000> : vector<2x4xf32>
    %3 = vector.multi_reduction <maximumf>, %0, %cst [2] : vector<2x4x32xf32> to vector<2x4xf32>
    %4 = vector.shape_cast %3 : vector<2x4xf32> to vector<2x4x1xf32>
    %5 = vector.broadcast %4 : vector<2x4x1xf32> to vector<2x4x32xf32>
    %6 = arith.subf %0, %5 : vector<2x4x32xf32>
    %7 = math.exp %6 : vector<2x4x32xf32>
    %cst_8 = arith.constant dense<0.000000e+00> : vector<2x4xf32>
    %8 = vector.multi_reduction <add>, %7, %cst_8 [2] : vector<2x4x32xf32> to vector<2x4xf32>
    %9 = math.log %8 : vector<2x4xf32>
    %10 = vector.shape_cast %4 : vector<2x4x1xf32> to vector<2x4xf32>
    %11 = arith.addf %9, %10 : vector<2x4xf32>
    %12 = tpu.iota {dimensions = array<i32: 2>} : vector<2x4x32xi32>
    %13 = vector.broadcast %2 : vector<2x4x1xi32> to vector<2x4x32xi32>
    %14 = arith.cmpi eq, %12, %13 : vector<2x4x32xi32>
    %cst_9 = arith.constant 0.000000e+00 : f32
    %15 = vector.broadcast %cst_9 : f32 to vector<2x4x32xf32>
    %16 = arith.select %14, %0, %15 : vector<2x4x32xi1>, vector<2x4x32xf32>
    %cst_10 = arith.constant dense<0.000000e+00> : vector<2x4xf32>
    %17 = vector.multi_reduction <add>, %16, %cst_10 [2] : vector<2x4x32xf32> to vector<2x4xf32>
    %18 = arith.subf %11, %17 : vector<2x4xf32>
    %c0_11 = arith.constant 0 : index
    %c0_12 = arith.constant 0 : index
    %19 = vector.load %arg4[%c0_11, %c0_12] : memref<2x4xf32, #tpu.memory_space<vmem>>, vector<2x4xf32>
    tpu.vector_store %arg4[%c0_11, %c0_12], %18 {strides = array<i32>} : memref<2x4xf32, #tpu.memory_space<vmem>>, vector<2x4xf32>,
    %cst_13 = arith.constant 2.500000e-01 : f32
    %20 = vector.broadcast %cst_13 : f32 to vector<2x4x32xf32>
    %21 = arith.mulf %6, %20 : vector<2x4x32xf32>
    %22 = math.exp %21 : vector<2x4x32xf32>
    %cst_14 = arith.constant dense<0.000000e+00> : vector<2x4xf32>
    %23 = vector.multi_reduction <add>, %22, %cst_14 [2] : vector<2x4x32xf32> to vector<2x4xf32>
    %24 = vector.shape_cast %23 : vector<2x4xf32> to vector<2x4x1xf32>
    %25 = math.log %24 : vector<2x4x1xf32>
    %26 = vector.broadcast %25 : vector<2x4x1xf32> to vector<2x4x32xf32>
    %27 = arith.subf %21, %26 : vector<2x4x32xf32>
    %cst_15 = arith.constant dense<0xFF800000> : vector<2x4xf32>
    %28 = vector.multi_reduction <maximumf>, %1, %cst_15 [2] : vector<2x4x32xf32> to vector<2x4xf32>
    %29 = vector.shape_cast %28 : vector<2x4xf32> to vector<2x4x1xf32>
    %30 = vector.broadcast %29 : vector<2x4x1xf32> to vector<2x4x32xf32>
    %31 = arith.subf %1, %30 : vector<2x4x32xf32>
    %cst_16 = arith.constant 2.500000e-01 : f32
    %32 = vector.broadcast %cst_16 : f32 to vector<2x4x32xf32>
    %33 = arith.mulf %31, %32 : vector<2x4x32xf32>
    %34 = math.exp %33 : vector<2x4x32xf32>
    %cst_17 = arith.constant dense<0.000000e+00> : vector<2x4xf32>
    %35 = vector.multi_reduction <add>, %34, %cst_17 [2] : vector<2x4x32xf32> to vector<2x4xf32>
    %36 = vector.shape_cast %35 : vector<2x4xf32> to vector<2x4x1xf32>
    %37 = math.log %36 : vector<2x4x1xf32>
    %38 = vector.broadcast %37 : vector<2x4x1xf32> to vector<2x4x32xf32>
    %39 = arith.subf %33, %38 : vector<2x4x32xf32>
    %40 = tpu.reciprocal %36 : vector<2x4x1xf32> -> vector<2x4x1xf32>
    %41 = vector.broadcast %40 : vector<2x4x1xf32> to vector<2x4x32xf32>
    %42 = arith.mulf %34, %41 : vector<2x4x32xf32>
    %43 = arith.subf %39, %27 : vector<2x4x32xf32>
    %44 = arith.mulf %42, %43 : vector<2x4x32xf32>
    %cst_18 = arith.constant dense<0.000000e+00> : vector<2x4xf32>
    %45 = vector.multi_reduction <add>, %44, %cst_18 [2] : vector<2x4x32xf32> to vector<2x4xf32>
    %cst_19 = arith.constant 1.600000e+01 : f32
    %46 = vector.broadcast %cst_19 : f32 to vector<2x4xf32>
    %47 = arith.mulf %45, %46 : vector<2x4xf32>
    %c0_20 = arith.constant 0 : index
    %c0_21 = arith.constant 0 : index
    %48 = vector.load %arg5[%c0_20, %c0_21] : memref<2x4xf32, #tpu.memory_space<vmem>>, vector<2x4xf32>
    tpu.vector_store %arg5[%c0_20, %c0_21], %47 {strides = array<i32>} : memref<2x4xf32, #tpu.memory_space<vmem>>, vector<2x4xf32>,
    %49 = vector.extract_strided_slice %1 {offsets = [0, 0, 0], sizes = [1, 4, 32], strides = [1, 1, 1]} : vector<2x4x32xf32> to vector<1x4x32xf32>
    %50 = vector.shape_cast %49 : vector<1x4x32xf32> to vector<4x32xf32>
    %51 = vector.extract_strided_slice %1 {offsets = [1, 0, 0], sizes = [1, 4, 32], strides = [1, 1, 1]} : vector<2x4x32xf32> to vector<1x4x32xf32>
    %52 = vector.shape_cast %51 : vector<1x4x32xf32> to vector<4x32xf32>
    %53 = arith.mulf %50, %52 : vector<4x32xf32>
    %cst_22 = arith.constant dense<0.000000e+00> : vector<4xf32>
    %54 = vector.multi_reduction <add>, %53, %cst_22 [1] : vector<4x32xf32> to vector<4xf32>
    %55 = arith.mulf %50, %50 : vector<4x32xf32>
    %cst_23 = arith.constant dense<0.000000e+00> : vector<4xf32>
    %56 = vector.multi_reduction <add>, %55, %cst_23 [1] : vector<4x32xf32> to vector<4xf32>
    %57 = arith.mulf %52, %52 : vector<4x32xf32>
    %cst_24 = arith.constant dense<0.000000e+00> : vector<4xf32>
    %58 = vector.multi_reduction <add>, %57, %cst_24 [1] : vector<4x32xf32> to vector<4xf32>
    %cst_25 = arith.constant 1.000000e-16 : f32
    %59 = vector.broadcast %cst_25 : f32 to vector<4xf32>
    %60 = arith.maximumf %56, %59 : vector<4xf32>
    %61 = math.rsqrt %60 : vector<4xf32>
    %62 = arith.mulf %54, %61 : vector<4xf32>
    %cst_26 = arith.constant 1.000000e-16 : f32
    %63 = vector.broadcast %cst_26 : f32 to vector<4xf32>
    %64 = arith.maximumf %58, %63 : vector<4xf32>
    %65 = math.rsqrt %64 : vector<4xf32>
    %66 = arith.mulf %62, %65 : vector<4xf32>
    %c0_27 = arith.constant 0 : index
    %c0_28 = arith.constant 0 : index
    %67 = vector.load %arg6[%c0_27, %c0_28] : memref<1x4xf32, #tpu.memory_space<vmem>>, vector<1x4xf32>
    %68 = vector.shape_cast %67 : vector<1x4xf32> to vector<4xf32>
    %69 = vector.shape_cast %66 : vector<4xf32> to vector<1x4xf32>
    tpu.vector_store %arg6[%c0_27, %c0_28], %69 {strides = array<i32>} : memref<1x4xf32, #tpu.memory_space<vmem>>, vector<1x4xf32>,
    return
  }
  func.func @transform_0(%arg0: i32) -> (i32, i32, i32) {
    %c0_i32 = arith.constant 0 : i32
    %c0_i32_0 = arith.constant 0 : i32
    %c0_i32_1 = arith.constant 0 : i32
    return %c0_i32, %arg0, %c0_i32_0 : i32, i32, i32
  }
  func.func @transform_1(%arg0: i32) -> (i32, i32, i32) {
    %c0_i32 = arith.constant 0 : i32
    %c0_i32_0 = arith.constant 0 : i32
    %c0_i32_1 = arith.constant 0 : i32
    return %c0_i32, %arg0, %c0_i32_0 : i32, i32, i32
  }
  func.func @transform_2(%arg0: i32) -> (i32, i32, i32) {
    %c0_i32 = arith.constant 0 : i32
    %c0_i32_0 = arith.constant 0 : i32
    %c0_i32_1 = arith.constant 0 : i32
    return %c0_i32, %arg0, %c0_i32_0 : i32, i32, i32
  }
  func.func @transform_3(%arg0: i32) -> (i32, i32) {
    %c0_i32 = arith.constant 0 : i32
    %c0_i32_0 = arith.constant 0 : i32
    return %c0_i32, %arg0 : i32, i32
  }
  func.func @transform_4(%arg0: i32) -> (i32, i32) {
    %c0_i32 = arith.constant 0 : i32
    %c0_i32_0 = arith.constant 0 : i32
    return %c0_i32, %arg0 : i32, i32
  }
  func.func @transform_5(%arg0: i32) -> (i32, i32) {
    %c0_i32 = arith.constant 0 : i32
    %c0_i32_0 = arith.constant 0 : i32
    return %c0_i32, %arg0 : i32, i32
  }
}

</mosaic_0001>

<bundles_post_ra>
// kernel: ccd_forward.2
= control target key start
LH: loop header
LB: loop body
LE: loop exit
PB: predicated region body
PF: predicated region fallthrough
CT: control target
= control target key end

     0   :  { %vm23_vm0 = vcmask 257024   ;;  %v229_v8 = vmov 0   ;;  %v48_v50 = vlaneseq  ;;  %vm180_vm3 = vcmask 24576   ;;  %s353_s0 = inlined_call_operand.vmem [shape: f32[2,4,32], index: 0, kind: input, shape index: {}]   ;;  %s354_s1 = inlined_call_operand.vmem [shape: f32[2,4,32], index: 1, kind: input, shape index: {}]   ;;  %s355_s2 = inlined_call_operand.vmem [shape: s32[2,4,1], index: 2, kind: input, shape index: {}]   ;;  %s356_s5 = inlined_call_operand.vmem [shape: f32[1,4], index: 5, kind: output, shape index: {2}]   ;;  %s357_s3 = inlined_call_operand.vmem [shape: f32[2,4], index: 3, kind: output, shape index: {0}]   ;;  %s358_s4 = inlined_call_operand.vmem [shape: f32[2,4], index: 4, kind: output, shape index: {1}]  }
   0x1   :  { %v263_v0 = vld [vmem:[%s353_s0] sm:$0xf]  ;;  %v273_v2 = vld [vmem:[%s353_s0 + $0x4] sm:$0xf]  ;;  %196 = vset.pattern.permute.xlu1 %v229_v8  ;;  %195 = vset.pattern.permute.xlu0 %v229_v8  ;;  %vm78_vm4 = vcmask 1041409   ;;  %vm81_vm5 = vcmask 25600  }
   0x2   :  { %v268_v1 = vld [vmem:[%s354_s1] sm:$0xf]  ;;  %v24_v3 = vsel %vm23_vm0, %v263_v0, -inf  ;;  %v20_v5 = vld [vmem:[%s354_s1 + $0x4] sm:$0xf]  ;;  %v27_v6 = vsel %vm23_vm0, %v273_v2, -inf }
   0x3   :  { %v101_v4 = vsel %vm23_vm0, %v268_v1, -inf  ;;  %25 = vmax.xlane.f32.xlu0 %v24_v3  ;;  %v104_v7 = vsel %vm23_vm0, %v20_v5, -inf  ;;  %v22_v33 = vld [vmem:[%s355_s2 + $0x4] sm:$0xf]  ;;  %v21_v34 = vld [vmem:[%s355_s2] sm:$0xf]  ;;  %v160_v40 = vmul.f32 %v268_v1, %v268_v1  ;;  %v164_v43 = vmul.f32 %v20_v5, %v20_v5 }
   0x4   :  { %102 = vmax.xlane.f32.xlu1 %v101_v4  ;;  %v156_v45 = vmul.f32 %v20_v5, %v268_v1  ;;  %v49_v52 = vand.u32 127, %v48_v50 }
   0x5   :  { %v161_v42 = vsel %vm23_vm0, %v160_v40, 0.0  ;;  %v165_v44 = vsel %vm23_vm0, %v164_v43, 0.0 }
   0x6   :  { %v157_v46 = vsel %vm23_vm0, %v156_v45, 0.0 }
   0x7   :  { %28 = vmax.xlane.f32.xlu0 %v27_v6 }
   0x8   :  { %105 = vmax.xlane.f32.xlu1 %v104_v7 }
  0x90   :  { %v285_v9 = vpop.xlane.xlu0 %25 }
  0x91   :  { %v103_v10 = vpop.xlane.xlu1 %102  ;;  %v30_v11 = vsub.f32 %v263_v0, %v285_v9 }
  0x92   :  { %v107_v12 = vsub.f32 %v268_v1, %v103_v10 }
  0x93   :  { %v290_v13 = vmul.f32 0.25, %v30_v11  ;;  %v32_v36 = vmul.f32 1.442695, %v30_v11 }
  0x94   :  { %v292_v14 = vmul.f32 0.25, %v107_v12  ;;  %v294_v15 = vpop.xlane.xlu0 %28 }
  0x95   :  { %v106_v16 = vpop.xlane.xlu1 %105  ;;  %v85_v17 = vmul.f32 1.442695, %v290_v13  ;;  %v31_v19 = vsub.f32 %v273_v2, %v294_v15 }
  0x96   :  { %v111_v18 = vmul.f32 1.442695, %v292_v14  ;;  %v108_v20 = vsub.f32 %v20_v5, %v106_v16 }
  0x97   :  { %197 = vpow2.f32 %v85_v17  ;;  %v300_v21 = vmul.f32 0.25, %v31_v19  ;;  %v34_v35 = vmul.f32 1.442695, %v31_v19 }
  0x98   :  { %199 = vpow2.f32 %v111_v18  ;;  %v302_v22 = vmul.f32 0.25, %v108_v20 }
  0x99   :  { %v87_v23 = vmul.f32 1.442695, %v300_v21 }
  0x9a   :  { %v113_v24 = vmul.f32 1.442695, %v302_v22 }
  0x9b   :  { %201 = vpow2.f32 %v87_v23 }
  0x9c   :  { %203 = vpow2.f32 %v113_v24 }
  0x9d   :  { %205 = vpow2.f32 %v34_v35 }
  0x9e   :  { %207 = vpow2.f32 %v32_v36 }
  0xa1   :  { %v198_v25 = vpop.eup %197 }
  0xa2   :  { %v306_v26 = vpop.eup %199  ;;  %v89_v27 = vsel %vm23_vm0, %v198_v25, 0.0 }
  0xa3   :  { %90 = vadd.xlane.f32.xlu0 %v89_v27  ;;  %v115_v28 = vsel %vm23_vm0, %v306_v26, 0.0 }
  0xa5   :  { %v202_v29 = vpop.eup %201 }
  0xa6   :  { %v311_v30 = vpop.eup %203  ;;  %v92_v31 = vsel %vm23_vm0, %v202_v29, 0.0 }
  0xa7   :  { %116 = vadd.xlane.f32.xlu0 %v115_v28  ;;  %93 = vadd.xlane.f32.xlu1 %v92_v31  ;;  %v118_v32 = vsel %vm23_vm0, %v311_v30, 0.0  ;;  %v206_v37 = vpop.eup %205 }
  0xa8   :  { %v39_v38 = vsel %vm23_vm0, %v206_v37, 0.0  ;;  %v208_v39 = vpop.eup %207 }
  0xa9   :  { %v36_v41 = vsel %vm23_vm0, %v208_v39, 0.0 }
  0xab   :  { %119 = vadd.xlane.f32.xlu1 %v118_v32 }
  0xbc   :  { %54 = vperm.xlu1 %196, %v22_v33  }
  0xbd   :  { %51 = vperm.xlu0 %195, %v21_v34  }
  0xdc   :  { %40 = vadd.xlane.f32.xlu0 %v39_v38 }
  0xe0   :  { %37 = vadd.xlane.f32.xlu1 %v36_v41 }
  0xe4   :  { %162 = vadd.xlane.f32.xlu1 %v161_v42 }
  0xe8   :  { %166 = vadd.xlane.f32.xlu1 %v165_v44 }
  0xec   :  { %158 = vadd.xlane.f32.xlu1 %v157_v46 }
 0x130   :  { %v91_v47 = vpop.xlane.xlu0 %90 }
 0x131   :  { %209 = vlog2.f32 %v91_v47 }
 0x134   :  { %v94_v48 = vpop.xlane.xlu1 %93  ;;  %v117_v49 = vpop.xlane.xlu0 %116 }
 0x135   :  { %211 = vlog2.f32 %v94_v48 }
 0x136   :  { %213 = vlog2.f32 %v117_v49 }
 0x137   :  { %215 = vrcp.f32 %v117_v49 }
 0x138   :  { %v120_v51 = vpop.xlane.xlu1 %119 }
 0x139   :  { %217 = vlog2.f32 %v120_v51 }
 0x13a   :  { %219 = vrcp.f32 %v120_v51 }
 0x13b   :  { %v210_v53 = vpop.eup %209 }
 0x13c   :  { %v52_v54 = vpop.permute.xlu0 %51  ;;  %v55_v55 = vpop.permute.xlu1 %54  ;;  %v96_v59 = vmul.f32 0.6931472, %v210_v53 }
 0x13d   :  { %vm56_vm1 = vcmp.eq.s32.totalorder %v49_v52, %v52_v54  ;;  %vm57_vm2 = vcmp.eq.s32.totalorder %v49_v52, %v55_v55 }
 0x13e   :  { %v58_v56 = vsel %vm56_vm1, %v263_v0, 0.0  ;;  %v59_v57 = vsel %vm57_vm2, %v273_v2, 0.0  ;;  %v99_v5 = vsub.f32 %v290_v13, %v96_v59 }
 0x13f   :  { %v212_v58 = vpop.eup %211  ;;  %v60_v60 = vsel %vm23_vm0, %v58_v56, 0.0  ;;  %v63_v63 = vsel %vm23_vm0, %v59_v57, 0.0 }
 0x140   :  { %v214_v61 = vpop.eup %213  ;;  %61 = vadd.xlane.f32.xlu1 %v60_v60  ;;  %v98_v3 = vmul.f32 0.6931472, %v212_v58 }
 0x141   :  { %v122_v62 = vmul.f32 0.6931472, %v214_v61  ;;  %v216_v1 = vpop.eup %215 }
 0x142   :  { %v129_v2 = vmul.f32 %v216_v1, %v306_v26  ;;  %v100_v10 = vsub.f32 %v300_v21, %v98_v3  ;;  %v71_v26 = vshrl.u32 %v48_v50, 7 }
 0x143   :  { %v218_v4 = vpop.eup %217  ;;  %v125_v6 = vsub.f32 %v292_v14, %v122_v62 }
 0x144   :  { %v124_v7 = vmul.f32 0.6931472, %v218_v4  ;;  %64 = vadd.xlane.f32.xlu1 %v63_v63  ;;  %v220_v0 = vpop.eup %219  ;;  %v72_v29 = vsub.s32 %v49_v52, %v71_v26 }
 0x145   :  { %v131_v8 = vsub.f32 %v125_v6, %v99_v5  ;;  %v130_v16 = vmul.f32 %v220_v0, %v311_v30 }
 0x146   :  { %v126_v11 = vsub.f32 %v302_v22, %v124_v7 }
 0x147   :  { %v133_v12 = vmul.f32 %v131_v8, %v129_v2 }
 0x148   :  { %v132_v17 = vsub.f32 %v126_v11, %v100_v10 }
 0x149   :  { %v135_v18 = vsel %vm23_vm0, %v133_v12, 0.0 }
 0x14a   :  { %136 = vadd.xlane.f32.xlu1 %v135_v18  ;;  %v134_v13 = vmul.f32 %v132_v17, %v130_v16 }
 0x14c   :  { %v138_v14 = vsel %vm23_vm0, %v134_v13, 0.0 }
 0x14d   :  { %139 = vadd.xlane.f32.xlu0 %v138_v14 }
 0x169   :  { %v41_v32 = vpop.xlane.xlu0 %40 }
 0x16d   :  { %v38_v19 = vpop.xlane.xlu1 %37 }
 0x171   :  { %v163_v20 = vpop.xlane.xlu1 %162 }
 0x172   :  { %v168_v23 = vmax.f32 %v163_v20, 1e-16 }
 0x174   :  { %221 = vrsqrt.f32 %v168_v23 }
 0x175   :  { %v167_v24 = vpop.xlane.xlu1 %166 }
 0x176   :  { %v171_v25 = vmax.f32 %v167_v24, 1e-16 }
 0x178   :  { %223 = vrsqrt.f32 %v171_v25 }
 0x179   :  { %v159_v22 = vpop.xlane.xlu1 %158  ;;  %225 = vlog2.f32 %v38_v19 }
 0x17a   :  { %227 = vlog2.f32 %v41_v32 }
 0x17e   :  { %v222_v21 = vpop.eup %221 }
 0x17f   :  { %v170_v27 = vmul.f32 %v222_v21, %v159_v22 }
 0x182   :  { %v224_v28 = vpop.eup %223 }
 0x183   :  { %v173_v30 = vmul.f32 %v224_v28, %v170_v27  ;;  %v226_v33 = vpop.eup %225 }
 0x184   :  { %v228_v34 = vpop.eup %227  ;;  %v43_v35 = vmul.f32 0.6931472, %v226_v33 }
 0x185   :  { %v178_v31 = vrot.slane %v173_v30, %v72_v29  ;;  %v45_v36 = vmul.f32 0.6931472, %v228_v34 }
 0x186   :  { %v46_v38 = vadd.f32 %v43_v35, %v285_v9 }
 0x187   :  { %181 = vst.msk [vmem:[%s356_s5] sm:$0x1] %vm180_vm3, %v178_v31  ;;  %v47_v40 = vadd.f32 %v45_v36, %v294_v15 }
 0x1cd   :  { %v62_v37 = vpop.xlane.xlu1 %61 }
 0x1ce   :  { %v66_v39 = vsub.f32 %v46_v38, %v62_v37 }
 0x1d0   :  { %v73_v43 = vrot.slane %v66_v39, %v72_v29 }
 0x1d1   :  { %v65_v41 = vpop.xlane.xlu1 %64 }
 0x1d2   :  { %v67_v42 = vsub.f32 %v47_v40, %v65_v41 }
 0x1d4   :  { %v77_v44 = vrot.slane %v67_v42, %v72_v29 }
 0x1d6   :  { %v79_v45 = vsel %vm78_vm4, %v77_v44, %v73_v43 }
 0x1d7   :  { %82 = vst.msk [vmem:[%s357_s3] sm:$0x3] %vm81_vm5, %v79_v45  ;;  %v137_v46 = vpop.xlane.xlu1 %136 }
 0x1d8   :  { %v141_v47 = vmul.f32 16.0, %v137_v46 }
 0x1da   :  { %v140_v48 = vpop.xlane.xlu0 %139  ;;  %v148_v50 = vrot.slane %v141_v47, %v72_v29 }
 0x1db   :  { %v142_v49 = vmul.f32 16.0, %v140_v48 }
 0x1dd   :  { %v152_v9 = vrot.slane %v142_v49, %v72_v29 }
 0x1df   :  { %v153_v51 = vsel %vm78_vm4, %v152_v9, %v148_v50 }
 0x1e0   :  { %155 = vst.msk [vmem:[%s358_s4] sm:$0x3] %vm81_vm5, %v153_v51 }

// kernel: ccd_forward.3
= control target key start
LH: loop header
LB: loop body
LE: loop exit
PB: predicated region body
PF: predicated region fallthrough
CT: control target
= control target key end

     0   :  { %v330_v8 = vmov 0   ;;  %vm115_vm4 = vcmask 130112   ;;  %vm122_vm5 = vcmask 195712   ;;  %vm129_vm6 = vcmask 261312   ;;  %s510_s0 = inlined_call_operand.vmem [shape: f32[32,128], index: 0, kind: input, shape index: {}]   ;;  %s511_s1 = inlined_call_operand.vmem [shape: f32[32,128], index: 1, kind: input, shape index: {}]   ;;  %s512_s2 = inlined_call_operand.vmem [shape: s32[32,1], index: 2, kind: input, shape index: {}]   ;;  %s513_s3 = inlined_call_operand.vmem [shape: f32[1,32], index: 3, kind: output, shape index: {0}]   ;;  %s514_s4 = inlined_call_operand.vmem [shape: f32[1,32], index: 4, kind: output, shape index: {1}]  }
   0x1   :  { %v359_v0 = vld [vmem:[%s510_s0] sm:$0xff]  ;;  %v368_v2 = vld [vmem:[%s510_s0 + $0x8] sm:$0xff]  ;;  %v377_v4 = vld [vmem:[%s510_s0 + $0x10] sm:$0xff]  ;;  %273 = vset.pattern.permute.xlu1 %v330_v8  ;;  %272 = vset.pattern.permute.xlu0 %v330_v8  ;;  %vm132_vm7 = vcmask 253952  }
   0x2   :  { %v20_v1 = vld [vmem:[%s511_s1] sm:$0xff]  ;;  %28 = vmax.xlane.f32.xlu0 %v359_v0  ;;  %v21_v3 = vld [vmem:[%s511_s1 + $0x8] sm:$0xff]  ;;  %v22_v5 = vld [vmem:[%s511_s1 + $0x10] sm:$0xff] }
   0x3   :  { %166 = vmax.xlane.f32.xlu1 %v20_v1  ;;  %v386_v6 = vld [vmem:[%s510_s0 + $0x18] sm:$0xff]  ;;  %v25_v44 = vld [vmem:[%s512_s2 + $0x8] sm:$0xff]  ;;  %v26_v45 = vld [vmem:[%s512_s2 + $0x10] sm:$0xff] }
   0x4   :  { %v391_v7 = vld [vmem:[%s511_s1 + $0x18] sm:$0xff]  ;;  %v24_v46 = vld [vmem:[%s512_s2] sm:$0xff] }
   0x5   :  { %v27_v54 = vld [vmem:[%s512_s2 + $0x18] sm:$0xff] }
   0x6   :  { %30 = vmax.xlane.f32.xlu0 %v368_v2 }
   0x7   :  { %168 = vmax.xlane.f32.xlu1 %v21_v3 }
   0xa   :  { %32 = vmax.xlane.f32.xlu0 %v377_v4 }
   0xb   :  { %170 = vmax.xlane.f32.xlu1 %v22_v5 }
   0xe   :  { %34 = vmax.xlane.f32.xlu0 %v386_v6 }
   0xf   :  { %172 = vmax.xlane.f32.xlu1 %v391_v7 }
  0x8f   :  { %v395_v9 = vpop.xlane.xlu0 %28 }
  0x90   :  { %v167_v10 = vpop.xlane.xlu1 %166  ;;  %v399_v11 = vsub.f32 %v359_v0, %v395_v9 }
  0x91   :  { %v174_v12 = vsub.f32 %v20_v1, %v167_v10 }
  0x92   :  { %v402_v13 = vmul.f32 0.25, %v399_v11  ;;  %v40_v55 = vmul.f32 1.442695, %v399_v11  ;;  %v68_v11 = vlaneseq }
  0x93   :  { %v404_v14 = vmul.f32 0.25, %v174_v12  ;;  %v406_v15 = vpop.xlane.xlu0 %30 }
  0x94   :  { %v169_v16 = vpop.xlane.xlu1 %168  ;;  %v138_v17 = vmul.f32 1.442695, %v402_v13  ;;  %v37_v19 = vsub.f32 %v368_v2, %v406_v15 }
  0x95   :  { %v182_v18 = vmul.f32 1.442695, %v404_v14  ;;  %v175_v20 = vsub.f32 %v21_v3, %v169_v16 }
  0x96   :  { %274 = vpow2.f32 %v138_v17  ;;  %v412_v21 = vmul.f32 0.25, %v37_v19  ;;  %v42_v50 = vmul.f32 1.442695, %v37_v19 }
  0x97   :  { %v414_v22 = vmul.f32 0.25, %v175_v20  ;;  %v416_v23 = vpop.xlane.xlu0 %32  ;;  %276 = vpow2.f32 %v182_v18 }
  0x98   :  { %v171_v24 = vpop.xlane.xlu1 %170  ;;  %v140_v25 = vmul.f32 1.442695, %v412_v21  ;;  %v38_v26 = vsub.f32 %v377_v4, %v416_v23 }
  0x99   :  { %v176_v27 = vsub.f32 %v22_v5, %v171_v24  ;;  %v184_v28 = vmul.f32 1.442695, %v414_v22 }
  0x9a   :  { %278 = vpow2.f32 %v140_v25  ;;  %v422_v29 = vmul.f32 0.25, %v38_v26  ;;  %v44_v56 = vmul.f32 1.442695, %v38_v26  ;;  %v466_v25 = vand.u32 127, %v68_v11 }
  0x9b   :  { %v424_v30 = vmul.f32 0.25, %v176_v27  ;;  %v426_v31 = vpop.xlane.xlu0 %34  ;;  %280 = vpow2.f32 %v184_v28 }
  0x9c   :  { %v142_v32 = vmul.f32 1.442695, %v422_v29  ;;  %v39_v34 = vsub.f32 %v386_v6, %v426_v31  ;;  %v173_v47 = vpop.xlane.xlu1 %172 }
  0x9d   :  { %v186_v33 = vmul.f32 1.442695, %v424_v30  ;;  %v177_v48 = vsub.f32 %v391_v7, %v173_v47 }
  0x9e   :  { %282 = vpow2.f32 %v142_v32  ;;  %v432_v35 = vmul.f32 0.25, %v39_v34  ;;  %v46_v57 = vmul.f32 1.442695, %v39_v34 }
  0x9f   :  { %284 = vpow2.f32 %v186_v33  ;;  %v454_v49 = vmul.f32 0.25, %v177_v48 }
  0xa0   :  { %v275_v36 = vpop.eup %274  ;;  %v144_v37 = vmul.f32 1.442695, %v432_v35 }
  0xa1   :  { %146 = vadd.xlane.f32.xlu0 %v275_v36  ;;  %v435_v38 = vpop.eup %276  ;;  %v188_v51 = vmul.f32 1.442695, %v454_v49 }
  0xa2   :  { %286 = vpow2.f32 %v144_v37 }
  0xa3   :  { %288 = vpow2.f32 %v42_v50 }
  0xa4   :  { %v279_v39 = vpop.eup %278  ;;  %290 = vpow2.f32 %v188_v51 }
  0xa5   :  { %190 = vadd.xlane.f32.xlu0 %v435_v38  ;;  %148 = vadd.xlane.f32.xlu1 %v279_v39  ;;  %v438_v40 = vpop.eup %280  ;;  %292 = vpow2.f32 %v40_v55 }
  0xa6   :  { %294 = vpow2.f32 %v44_v56 }
  0xa7   :  { %296 = vpow2.f32 %v46_v57 }
  0xa8   :  { %v283_v41 = vpop.eup %282 }
  0xa9   :  { %192 = vadd.xlane.f32.xlu1 %v438_v40  ;;  %150 = vadd.xlane.f32.xlu0 %v283_v41  ;;  %v441_v42 = vpop.eup %284 }
  0xac   :  { %v287_v43 = vpop.eup %286 }
  0xad   :  { %194 = vadd.xlane.f32.xlu1 %v441_v42  ;;  %152 = vadd.xlane.f32.xlu0 %v287_v43  ;;  %v289_v52 = vpop.eup %288 }
  0xae   :  { %v457_v53 = vpop.eup %290 }
  0xaf   :  { %v293_v58 = vpop.eup %292 }
  0xb0   :  { %v295_v59 = vpop.eup %294 }
  0xb1   :  { %v297_v60 = vpop.eup %296 }
  0xbe   :  { %74 = vperm.xlu1 %273, %v25_v44  }
  0xc2   :  { %77 = vperm.xlu1 %273, %v26_v45  }
  0xc3   :  { %71 = vperm.xlu0 %272, %v24_v46  }
  0xe2   :  { %50 = vadd.xlane.f32.xlu0 %v289_v52 }
  0xe6   :  { %196 = vadd.xlane.f32.xlu1 %v457_v53 }
  0xf7   :  { %80 = vperm.xlu1 %273, %v27_v54  }
 0x11b   :  { %48 = vadd.xlane.f32.xlu1 %v293_v58 }
 0x11f   :  { %52 = vadd.xlane.f32.xlu1 %v295_v59 }
 0x123   :  { %54 = vadd.xlane.f32.xlu1 %v297_v60 }
 0x12e   :  { %v147_v61 = vpop.xlane.xlu0 %146 }
 0x12f   :  { %298 = vlog2.f32 %v147_v61 }
 0x132   :  { %v149_v62 = vpop.xlane.xlu1 %148  ;;  %v191_v63 = vpop.xlane.xlu0 %190 }
 0x133   :  { %300 = vlog2.f32 %v149_v62 }
 0x134   :  { %302 = vlog2.f32 %v191_v63 }
 0x136   :  { %v193_v1 = vpop.xlane.xlu1 %192  ;;  %v151_v3 = vpop.xlane.xlu0 %150 }
 0x137   :  { %304 = vlog2.f32 %v193_v1 }
 0x138   :  { %306 = vrcp.f32 %v191_v63 }
 0x139   :  { %308 = vlog2.f32 %v151_v3  ;;  %v299_v5 = vpop.eup %298 }
 0x13a   :  { %v195_v7 = vpop.xlane.xlu1 %194  ;;  %v155_v10 = vmul.f32 0.6931472, %v299_v5  ;;  %v153_v16 = vpop.xlane.xlu0 %152 }
 0x13b   :  { %310 = vlog2.f32 %v195_v7 }
 0x13c   :  { %312 = vrcp.f32 %v193_v1  ;;  %v162_v20 = vsub.f32 %v402_v13, %v155_v10 }
 0x13d   :  { %v301_v8 = vpop.eup %300  ;;  %314 = vrcp.f32 %v195_v7 }
 0x13e   :  { %v303_v12 = vpop.eup %302  ;;  %v75_v17 = vpop.permute.xlu1 %74  ;;  %v157_v24 = vmul.f32 0.6931472, %v301_v8  ;;  %316 = vlog2.f32 %v153_v16 }
 0x13f   :  { %v199_v18 = vmul.f32 0.6931472, %v303_v12  ;;  %vm83_vm2 = vcmp.eq.s32.totalorder %v466_v25, %v75_v17  ;;  %v107_v17 = vshrl.u32 %v68_v11, 7 }
 0x140   :  { %v163_v43 = vsub.f32 %v412_v21, %v157_v24 }
 0x141   :  { %v305_v19 = vpop.eup %304  ;;  %v206_v26 = vsub.f32 %v404_v14, %v199_v18 }
 0x142   :  { %v307_v27 = vpop.eup %306  ;;  %v201_v28 = vmul.f32 0.6931472, %v305_v19  ;;  %v78_v32 = vpop.permute.xlu1 %77 }
 0x143   :  { %v72_v33 = vpop.permute.xlu0 %71  ;;  %v309_v34 = vpop.eup %308  ;;  %vm84_vm0 = vcmp.eq.s32.totalorder %v466_v25, %v78_v32  ;;  %v218_v36 = vsub.f32 %v206_v26, %v162_v20  ;;  %v214_v44 = vmul.f32 %v307_v27, %v435_v38 }
 0x144   :  { %vm82_vm1 = vcmp.eq.s32.totalorder %v466_v25, %v72_v33  ;;  %v88_v37 = vsel %vm84_vm0, %v377_v4, 0.0  ;;  %v207_v39 = vsub.f32 %v414_v22, %v201_v28  ;;  %v159_v14 = vmul.f32 0.6931472, %v309_v34 }
 0x145   :  { %v86_v13 = vsel %vm82_vm1, %v359_v0, 0.0  ;;  %v311_v41 = vpop.eup %310  ;;  %94 = vadd.xlane.f32.xlu0 %v88_v37  ;;  %v222_v47 = vmul.f32 %v218_v36, %v214_v44  ;;  %v87_v4 = vsel %vm83_vm2, %v368_v2, 0.0  ;;  %v117_v28 = vadd.s32 4294967280, %v466_v25 }
 0x146   :  { %90 = vadd.xlane.f32.xlu1 %v86_v13  ;;  %v313_v45 = vpop.eup %312  ;;  %v203_v46 = vmul.f32 0.6931472, %v311_v41  ;;  %v219_v48 = vsub.f32 %v207_v39, %v163_v43  ;;  %v164_v22 = vsub.f32 %v422_v29, %v159_v14  ;;  %v108_v33 = vsub.s32 %v466_v25, %v107_v17 }
 0x147   :  { %v215_v21 = vmul.f32 %v313_v45, %v438_v40  ;;  %v315_v50 = vpop.eup %314  ;;  %v124_v36 = vadd.s32 4294967272, %v466_v25  ;;  %v120_v39 = vsub.s32 %v117_v28, %v107_v17 }
 0x148   :  { %v208_v0 = vsub.f32 %v424_v30, %v203_v46  ;;  %v216_v38 = vmul.f32 %v315_v50, %v441_v42  ;;  %v317_v30 = vpop.eup %316 }
 0x149   :  { %226 = vadd.xlane.f32.xlu0 %v222_v47  ;;  %v223_v51 = vmul.f32 %v219_v48, %v215_v21  ;;  %v161_v40 = vmul.f32 0.6931472, %v317_v30  ;;  %v127_v43 = vsub.s32 %v124_v36, %v107_v17 }
 0x14a   :  { %92 = vadd.xlane.f32.xlu1 %v87_v4  ;;  %v220_v52 = vsub.f32 %v208_v0, %v164_v22 }
 0x14b   :  { %v165_v59 = vsub.f32 %v432_v35, %v161_v40 }
 0x14c   :  { %v224_v54 = vmul.f32 %v220_v52, %v216_v38 }
 0x14e   :  { %228 = vadd.xlane.f32.xlu1 %v223_v51 }
 0x152   :  { %230 = vadd.xlane.f32.xlu1 %v224_v54 }
 0x16f   :  { %v51_v1 = vpop.xlane.xlu0 %50 }
 0x173   :  { %v197_v55 = vpop.xlane.xlu1 %196 }
 0x174   :  { %318 = vlog2.f32 %v197_v55 }
 0x175   :  { %320 = vrcp.f32 %v197_v55 }
 0x176   :  { %322 = vlog2.f32 %v51_v1 }
 0x177   :  { %v81_v2 = vpop.permute.xlu1 %80 }
 0x178   :  { %vm85_vm3 = vcmp.eq.s32.totalorder %v466_v25, %v81_v2 }
 0x179   :  { %v89_v29 = vsel %vm85_vm3, %v386_v6, 0.0 }
 0x17a   :  { %96 = vadd.xlane.f32.xlu0 %v89_v29 }
 0x17e   :  { %v319_v56 = vpop.eup %318 }
 0x17f   :  { %v205_v57 = vmul.f32 0.6931472, %v319_v56  ;;  %v321_v58 = vpop.eup %320 }
 0x180   :  { %v217_v60 = vmul.f32 %v321_v58, %v457_v53  ;;  %v323_v5 = vpop.eup %322 }
 0x181   :  { %v209_v42 = vsub.f32 %v454_v49, %v205_v57  ;;  %v59_v10 = vmul.f32 0.6931472, %v323_v5  ;;  %v110_v49 = vadd.s32 4294967288, %v466_v25 }
 0x183   :  { %v221_v61 = vsub.f32 %v209_v42, %v165_v59  ;;  %v65_v18 = vadd.f32 %v59_v10, %v406_v15  ;;  %v113_v26 = vsub.s32 %v110_v49, %v107_v17 }
 0x185   :  { %v225_v62 = vmul.f32 %v221_v61, %v217_v60 }
 0x187   :  { %232 = vadd.xlane.f32.xlu1 %v225_v62 }
 0x1a8   :  { %v49_v63 = vpop.xlane.xlu1 %48 }
 0x1a9   :  { %324 = vlog2.f32 %v49_v63 }
 0x1ac   :  { %v53_v3 = vpop.xlane.xlu1 %52 }
 0x1ad   :  { %326 = vlog2.f32 %v53_v3 }
 0x1b0   :  { %v55_v6 = vpop.xlane.xlu1 %54 }
 0x1b1   :  { %328 = vlog2.f32 %v55_v6 }
 0x1b3   :  { %v325_v8 = vpop.eup %324 }
 0x1b4   :  { %v57_v12 = vmul.f32 0.6931472, %v325_v8 }
 0x1b6   :  { %v64_v24 = vadd.f32 %v57_v12, %v395_v9 }
 0x1b7   :  { %v327_v35 = vpop.eup %326 }
 0x1b8   :  { %v61_v20 = vmul.f32 0.6931472, %v327_v35 }
 0x1ba   :  { %v66_v37 = vadd.f32 %v61_v20, %v416_v23 }
 0x1bb   :  { %v329_v19 = vpop.eup %328 }
 0x1bc   :  { %v63_v32 = vmul.f32 0.6931472, %v329_v19 }
 0x1be   :  { %v67_v9 = vadd.f32 %v63_v32, %v426_v31 }
 0x1d2   :  { %v95_v53 = vpop.xlane.xlu0 %94 }
 0x1d3   :  { %v91_v7 = vpop.xlane.xlu1 %90  ;;  %v100_v15 = vsub.f32 %v66_v37, %v95_v53 }
 0x1d4   :  { %v98_v34 = vsub.f32 %v64_v24, %v91_v7 }
 0x1d5   :  { %v121_v47 = vrot.slane %v100_v15, %v120_v39 }
 0x1d6   :  { %v227_v13 = vpop.xlane.xlu0 %226  ;;  %v109_v41 = vrot.slane %v98_v34, %v108_v33 }
 0x1d7   :  { %v93_v16 = vpop.xlane.xlu1 %92  ;;  %v234_v22 = vmul.f32 16.0, %v227_v13 }
 0x1d8   :  { %v99_v27 = vsub.f32 %v65_v18, %v93_v16 }
 0x1d9   :  { %v245_v52 = vrot.slane %v234_v22, %v108_v33 }
 0x1da   :  { %v114_v11 = vrot.slane %v99_v27, %v113_v26 }
 0x1db   :  { %v229_v14 = vpop.xlane.xlu1 %228 }
 0x1dc   :  { %v116_v45 = vsel %vm115_vm4, %v114_v11, %v109_v41  ;;  %v235_v31 = vmul.f32 16.0, %v229_v14 }
 0x1dd   :  { %v123_v23 = vsel %vm122_vm5, %v121_v47, %v116_v45 }
 0x1de   :  { %v249_v21 = vrot.slane %v235_v31, %v113_v26 }
 0x1df   :  { %v231_v4 = vpop.xlane.xlu1 %230 }
 0x1e0   :  { %v236_v0 = vmul.f32 16.0, %v231_v4  ;;  %v250_v54 = vsel %vm115_vm4, %v249_v21, %v245_v52 }
 0x1e2   :  { %v254_v50 = vrot.slane %v236_v0, %v120_v39 }
 0x1e4   :  { %v255_v2 = vsel %vm122_vm5, %v254_v50, %v250_v54 }
 0x207   :  { %v97_v44 = vpop.xlane.xlu0 %96 }
 0x208   :  { %v101_v46 = vsub.f32 %v67_v9, %v97_v44 }
 0x20a   :  { %v128_v25 = vrot.slane %v101_v46, %v127_v43 }
 0x20c   :  { %v130_v48 = vsel %vm129_vm6, %v128_v25, %v123_v23 }
 0x20d   :  { %133 = vst.msk [vmem:[%s513_s3] sm:$0x1] %vm132_vm7, %v130_v48 }
 0x214   :  { %v233_v51 = vpop.xlane.xlu1 %232 }
 0x215   :  { %v237_v38 = vmul.f32 16.0, %v233_v51 }
 0x217   :  { %v259_v55 = vrot.slane %v237_v38, %v127_v43 }
 0x219   :  { %v260_v29 = vsel %vm129_vm6, %v259_v55, %v255_v2 }
 0x21a   :  { %262 = vst.msk [vmem:[%s514_s4] sm:$0x1] %vm132_vm7, %v260_v29 }

</bundles_post_ra>
